<compile_context>
chip_gen: v7x
topology: tpu7x:2x2x1
jax: 0.10.0
libtpu: 0.0.40
codegen_flags: <defaults>
</compile_context>

<pallas_src>
import jax
import jax.numpy as jnp
from jax.experimental import pallas as pl
from jax.experimental.pallas import tpu as pltpu


def _round_up(x, m):
    return ((x + m - 1) // m) * m


def _cdiv(a, b):
    return -(-a // b)


def _choose_tiles(B, T, C_in, C_out, in_bytes, out_bytes,
                  *, t_tile_max=32768, vmem_budget=40 << 20,
                  step_target_bytes=4 << 20):
    """Pick (b_tile, t_tile): big lane-dense tiles, bounded VMEM, >=2 programs."""
    # VMEM cost per time column: double-buffered in/out blocks + f32
    # scores/e intermediates -> cap t_tile so the footprint stays in budget.
    col_bytes = 2 * (C_in * in_bytes + C_out * out_bytes) + 2 * C_out * 4
    t_cap = max(128, (vmem_budget // max(col_bytes, 1)) // 128 * 128)
    t_max = min(t_tile_max, t_cap)

    # Balanced, lane-aligned time tiles: padding waste per tile < 128 columns.
    T128 = _round_up(T, 128)
    n_t = max(1, _cdiv(T128, t_max))
    t_tile = _round_up(_cdiv(T128, n_t), 128)

    # With a single batch element make sure there are >= 2 time tiles so both
    # v7x TensorCores get work.
    if B == 1 and _cdiv(T, t_tile) < 2 and T128 >= 256:
        t_tile = _round_up(_cdiv(T128, 2), 128)
    n_t = _cdiv(T, t_tile)

    # Batch blocking: grow b_tile while per-step traffic is small, b_tile
    # divides B, and we keep >= 2 parallel programs overall.
    def step_bytes(bt):
        return bt * t_tile * (C_in * in_bytes + C_out * out_bytes)

    b_tile = 1
    while (b_tile * 2 <= B
           and B % (b_tile * 2) == 0
           and (B // (b_tile * 2)) * n_t >= 2
           and step_bytes(b_tile * 2) <= step_target_bytes):
        b_tile *= 2

    return b_tile, t_tile


def _make_kernel(T, t_tile, b_tile, needs_tail_mask):
    def kernel(x_ref, w_ref, b_ref, o_ref):
        # x_ref: (b_tile, C_in,  t_tile)   input tf_rep tile
        # w_ref: (C_out, C_in)             masker weight (1x1 conv == channel matmul)
        # b_ref: (C_out, 1)                masker bias
        # o_ref: (b_tile, C_out, t_tile)   softmaxed mask tile
        w = w_ref[...].astype(jnp.float32)
        b = b_ref[...].astype(jnp.float32)

        if needs_tail_mask:
            # Last time tile is ragged: zero the garbage lanes beyond T.  The
            # corresponding output columns are dropped by the clipped output
            # DMA, but masking keeps NaN/Inf out of the compute entirely.
            col = (pl.program_id(1) * t_tile
                   + jax.lax.broadcasted_iota(jnp.int32, (1, t_tile), 1))
            valid = col < T  # (1, t_tile), broadcast over channels

        # Small static unroll over the batch block: keeps the matmul 2-D
        # (no batched-dot relayout) and the softmax lane-dense.
        for bb in range(b_tile):
            x = x_ref[bb].astype(jnp.float32)          # (C_in, t_tile)
            if needs_tail_mask:
                x = jnp.where(valid, x, 0.0)
            scores = jnp.dot(w, x, preferred_element_type=jnp.float32) + b
            # softmax over the channel axis (PyTorch dim 1)
            m = jnp.max(scores, axis=0, keepdims=True)
            e = jnp.exp(scores - m)
            denom = jnp.sum(e, axis=0, keepdims=True)
            # approx reciprocal lowers to the EUP (otherwise-idle slot),
            # error ~2^-12 -- negligible for a mask, denom >= 1 by construction.
            o_ref[bb] = (e * pl.reciprocal(denom, approx=True)).astype(o_ref.dtype)

    return kernel


def plain_model_forward(tf_rep, weight, bias, *, t_tile_max=32768, out_dtype=None):
    """tf_rep: (B, C_in, T); weight: (C_out, C_in); bias: (C_out,)."""
    B, C_in, T = tf_rep.shape
    C_out = weight.shape[0]
    # Mask dtype follows the input by default (matches the PyTorch module);
    # callers may pass out_dtype=jnp.bfloat16 to cut output HBM traffic.
    out_dtype = tf_rep.dtype if out_dtype is None else jnp.dtype(out_dtype)

    in_bytes = jnp.dtype(tf_rep.dtype).itemsize
    out_bytes = jnp.dtype(out_dtype).itemsize

    b_tile, t_tile = _choose_tiles(B, T, C_in, C_out, in_bytes, out_bytes,
                                   t_tile_max=t_tile_max)
    grid = (_cdiv(B, b_tile), _cdiv(T, t_tile))
    needs_tail_mask = (T % t_tile) != 0

    # Scoped-VMEM budget from the actual tile footprint: double-buffered
    # in/out blocks + resident params + f32 intermediates + headroom.
    x_blk = b_tile * C_in * t_tile * in_bytes
    o_blk = b_tile * C_out * t_tile * out_bytes
    params = (C_out * C_in + C_out) * 4
    inter = 2 * b_tile * C_out * t_tile * 4        # scores + e in f32
    vmem_limit = 2 * (x_blk + o_blk) + 2 * params + inter + (4 << 20)
    vmem_limit = int(min(max(vmem_limit, 16 << 20), 48 << 20))

    bias2d = bias.reshape(C_out, 1)

    out = pl.pallas_call(
        _make_kernel(T, t_tile, b_tile, needs_tail_mask),
        out_shape=jax.ShapeDtypeStruct((B, C_out, T), out_dtype),
        grid_spec=pltpu.PrefetchScalarGridSpec(
            num_scalar_prefetch=0,
            grid=grid,
            in_specs=[
                # x: batch block, full channels, one time tile (ragged tail OK)
                pl.BlockSpec((b_tile, C_in, t_tile), lambda b, t: (b, 0, t)),
                # weight: whole matrix, constant block index -> VMEM-resident
                pl.BlockSpec((C_out, C_in), lambda b, t: (0, 0)),
                # bias: whole vector (as column), constant block index
                pl.BlockSpec((C_out, 1), lambda b, t: (0, 0)),
            ],
            out_specs=pl.BlockSpec(
                (b_tile, C_out, t_tile), lambda b, t: (b, 0, t)
            ),
        ),
        compiler_params=pltpu.CompilerParams(
            dimension_semantics=("parallel", "parallel"),
            vmem_limit_bytes=vmem_limit,
        ),
    )(tf_rep, weight, bias2d)

    return out


def plain_model_reference(tf_rep, weight, bias):
    scores = jnp.einsum("oc,bct->bot", weight, tf_rep) + bias[None, :, None]
    return jax.nn.softmax(scores, axis=1)


if __name__ == "__main__":
    key = jax.random.PRNGKey(0)
    k_x, k_w, k_b = jax.random.split(key, 3)

    # Small shapes consistent with the forward: (B, C, T) time-frequency rep.
    # T deliberately NOT a multiple of 128 to exercise the ragged-tail path.
    B, C_in, C_out, T = 2, 8, 16, 2000

    tf_rep = jax.random.normal(k_x, (B, C_in, T), dtype=jnp.float32)
    # Deterministic masker parameters (synthetic, not a checkpoint load).
    weight = jax.random.normal(k_w, (C_out, C_in), dtype=jnp.float32) * 0.1
    bias = jax.random.normal(k_b, (C_out,), dtype=jnp.float32) * 0.01

    out = plain_model_forward(tf_rep, weight, bias)
    out = jax.block_until_ready(out)

    ref = plain_model_reference(tf_rep, weight, bias)
    assert out.shape == (B, C_out, T)
    # approx reciprocal (EUP vrcp) has ~2^-12 relative error -> relaxed tol.
    assert jnp.allclose(out, ref, atol=2e-3, rtol=2e-3)
    # softmax over dim 1 must sum to 1
    assert jnp.allclose(jnp.sum(out, axis=1), 1.0, atol=2e-3)

    print("KERNEL_OK")
</pallas_src>

<mosaic_0001>
module attributes {stable_mosaic.version = 11 : i64} {
  func.func @kernel(%arg0: i32, %arg1: i32, %arg2: memref<1x8x2048xf32, #tpu.memory_space<vmem>>, %arg3: memref<16x8xf32, #tpu.memory_space<vmem>>, %arg4: memref<16x1xf32, #tpu.memory_space<vmem>>, %arg5: memref<1x16x2048xf32, #tpu.memory_space<vmem>>) attributes {dimension_semantics = [#tpu.dimension_semantics<parallel>, #tpu.dimension_semantics<parallel>], iteration_bounds = array<i64: 2, 1>, scalar_prefetch = 0 : i64, scratch_operands = 0 : i64, tpu.core_type = #tpu.core_type<tc>, window_params = [{transform_indices = @transform_0, window_bounds = array<i64: 1, 8, 2048>}, {pipeline_mode = #tpu.pipeline_mode<synchronous>, transform_indices = @transform_1, window_bounds = array<i64: 16, 8>}, {pipeline_mode = #tpu.pipeline_mode<synchronous>, transform_indices = @transform_2, window_bounds = array<i64: 16, 1>}, {transform_indices = @transform_3, window_bounds = array<i64: 1, 16, 2048>}]} {
    %c0 = arith.constant 0 : index
    %c0_0 = arith.constant 0 : index
    %0 = vector.load %arg3[%c0, %c0_0] : memref<16x8xf32, #tpu.memory_space<vmem>>, vector<16x8xf32>
    %c0_1 = arith.constant 0 : index
    %c0_2 = arith.constant 0 : index
    %1 = vector.load %arg4[%c0_1, %c0_2] : memref<16x1xf32, #tpu.memory_space<vmem>>, vector<16x1xf32>
    %c2048_i32 = arith.constant 2048 : i32
    %2 = arith.muli %arg1, %c2048_i32 : i32
    %3 = tpu.iota {dimensions = array<i32: 1>} : vector<1x2048xi32>
    %4 = vector.broadcast %2 : i32 to vector<1x2048xi32>
    %5 = arith.addi %4, %3 : vector<1x2048xi32>
    %c2000_i32 = arith.constant 2000 : i32
    %6 = vector.broadcast %c2000_i32 : i32 to vector<1x2048xi32>
    %7 = arith.cmpi slt, %5, %6 : vector<1x2048xi32>
    %c0_3 = arith.constant 0 : index
    %c0_4 = arith.constant 0 : index
    %c0_5 = arith.constant 0 : index
    %8 = vector.load %arg2[%c0_3, %c0_4, %c0_5] : memref<1x8x2048xf32, #tpu.memory_space<vmem>>, vector<1x8x2048xf32>
    %9 = vector.shape_cast %8 : vector<1x8x2048xf32> to vector<8x2048xf32>
    %cst = arith.constant 0.000000e+00 : f32
    %10 = vector.shape_cast %7 : vector<1x2048xi1> to vector<1x2048xi1>
    %11 = vector.broadcast %10 : vector<1x2048xi1> to vector<8x2048xi1>
    %12 = vector.broadcast %cst : f32 to vector<8x2048xf32>
    %13 = arith.select %11, %9, %12 : vector<8x2048xi1>, vector<8x2048xf32>
    %cst_6 = arith.constant dense<0.000000e+00> : vector<16x2048xf32>
    %14 = tpu.matmul %0, %13, %cst_6 {dimension_numbers = #tpu.dot_dimension_numbers<[1], [0], [0], [1], [0, 0, 1, 1], [], []>} : vector<16x8xf32>, vector<8x2048xf32>, vector<16x2048xf32> -> vector<16x2048xf32>
    %15 = vector.broadcast %1 : vector<16x1xf32> to vector<16x2048xf32>
    %16 = arith.addf %14, %15 : vector<16x2048xf32>
    %cst_7 = arith.constant dense<0xFF800000> : vector<2048xf32>
    %17 = vector.multi_reduction <maximumf>, %16, %cst_7 [0] : vector<16x2048xf32> to vector<2048xf32>
    %18 = vector.shape_cast %17 : vector<2048xf32> to vector<1x2048xf32>
    %19 = vector.broadcast %18 : vector<1x2048xf32> to vector<16x2048xf32>
    %20 = arith.subf %16, %19 : vector<16x2048xf32>
    %21 = math.exp %20 : vector<16x2048xf32>
    %cst_8 = arith.constant dense<0.000000e+00> : vector<2048xf32>
    %22 = vector.multi_reduction <add>, %21, %cst_8 [0] : vector<16x2048xf32> to vector<2048xf32>
    %23 = vector.shape_cast %22 : vector<2048xf32> to vector<1x2048xf32>
    %24 = tpu.reciprocal %23 {approx = true} : vector<1x2048xf32> -> vector<1x2048xf32>
    %25 = vector.broadcast %24 : vector<1x2048xf32> to vector<16x2048xf32>
    %26 = arith.mulf %21, %25 : vector<16x2048xf32>
    %c0_9 = arith.constant 0 : index
    %c0_10 = arith.constant 0 : index
    %c0_11 = arith.constant 0 : index
    %27 = vector.load %arg5[%c0_9, %c0_10, %c0_11] : memref<1x16x2048xf32, #tpu.memory_space<vmem>>, vector<1x16x2048xf32>
    %28 = vector.shape_cast %27 : vector<1x16x2048xf32> to vector<16x2048xf32>
    %29 = vector.shape_cast %26 : vector<16x2048xf32> to vector<1x16x2048xf32>
    tpu.vector_store %arg5[%c0_9, %c0_10, %c0_11], %29 {strides = array<i32>} : memref<1x16x2048xf32, #tpu.memory_space<vmem>>, vector<1x16x2048xf32>,
    return
  }
  func.func @transform_0(%arg0: i32, %arg1: i32) -> (i32, i32, i32) {
    %c0_i32 = arith.constant 0 : i32
    %c0_i32_0 = arith.constant 0 : i32
    return %arg0, %c0_i32, %arg1 : i32, i32, i32
  }
  func.func @transform_1(%arg0: i32, %arg1: i32) -> (i32, i32) {
    %c0_i32 = arith.constant 0 : i32
    %c0_i32_0 = arith.constant 0 : i32
    %c0_i32_1 = arith.constant 0 : i32
    return %c0_i32, %c0_i32_0 : i32, i32
  }
  func.func @transform_2(%arg0: i32, %arg1: i32) -> (i32, i32) {
    %c0_i32 = arith.constant 0 : i32
    %c0_i32_0 = arith.constant 0 : i32
    %c0_i32_1 = arith.constant 0 : i32
    return %c0_i32, %c0_i32_0 : i32, i32
  }
  func.func @transform_3(%arg0: i32, %arg1: i32) -> (i32, i32, i32) {
    %c0_i32 = arith.constant 0 : i32
    %c0_i32_0 = arith.constant 0 : i32
    return %arg0, %c0_i32, %arg1 : i32, i32, i32
  }
}

</mosaic_0001>

<bundles_post_ra>
// kernel: tpu_custom_call.1
= control target key start
LH: loop header
LB: loop body
LE: loop exit
PB: predicated region body
PF: predicated region fallthrough
CT: control target
= control target key end

     0   :  { %8 = vsyncpa [#allocation3], 0  ;;  %s2361_s0 = inlined_call_operand.hbm [shape: f32[2,8,2000], index: 0, kind: input, shape index: {}]   ;;  %s2362_s1 = inlined_call_operand.vmem [shape: f32[16,8], index: 1, kind: input, shape index: {}]   ;;  %s2363_s2 = inlined_call_operand.vmem [shape: f32[16,1], index: 2, kind: input, shape index: {}]   ;;  %s2364_s3 = inlined_call_operand.hbm [shape: f32[2,16,2000], index: 3, kind: output, shape index: {}]  }
   0x1   :  { %10 = vsyncpa [#allocation3 + $0x1], 0 }
   0x2   :  { %11 = vsyncpa [#allocation4], 0 }
   0x3   :  { %13 = vsyncpa [#allocation4 + $0x1], 0  ;;  %s1799_s12 = smov 0   ;;  %s1801_s13 = smov 0  }
   0x4   :  { %s1803_s14 = smov 0   ;;  %s1805_s15 = smov 0  }
   0x5   :  { %s1807_s16 = smov 0   ;;  %s1809_s17 = smov 0  }
   0x6 LB: > { %s1462_s18 = sadd.s32 4294967295, %s1771_s17   ;;  %s1463_s19 = sadd.s32 4294967294, %s1771_s17   ;;  %s1771_s17 = sphi %s1809_s17, %s19_s17   ;;  %s1767_s16 = sphi %s1807_s16, %s2380_s16   ;;  %s1763_s15 = sphi %s1805_s15, %s2379_s15   ;;  %s1759_s14 = sphi %s1803_s14, %s2378_s14   ;;  %s1755_s13 = sphi %s1801_s13, %s2377_s13   ;;  %s1751_s12 = sphi %s1799_s12, %s2376_s12  }
   0x7   : > { %s31_s20 = sadd.s32 1, %s1767_s16  ;;  %s40_s21 = sadd.s32 1, %s1759_s14 }
   0x8   : > { %p33_p0 = scmp.ge.s32.totalorder %s31_s20, 2  ;;  %p47_p1 = scmp.ne.s32.totalorder %s1759_s14, %s1755_s13 }
   0x9   : > { %p48_p2 = scmp.eq.s32.totalorder %s1771_s17, 0  ;;  %p53_p3 = scmp.ne.s32.totalorder %s1755_s13, %s1751_s12 }
   0xa   : > { %s2382_s20 = smov (%p33_p0, %s31_s20), 0  ;;  %p54_p5 = scmp.eq.s32.totalorder %s1462_s18, 0 }
   0xb   : > { %p1840_p4 = por %p48_p2, %p47_p1  ;;  %s35_s23 = ssub.s32 %s1767_s16, %s2382_s20 }
   0xc   : > { %p121_p6 = scmp.eq.s32.totalorder %s1462_s18, 1  ;;  %p38_p7 = scmp.eq.s32.totalorder %s35_s23, 0 }
   0xd   : > { %p1846_p8 = por %p54_p5, %p53_p3  ;;  %p127_p10 = scmp.eq.s32.totalorder %s1463_s19, 1 }
   0xe   : > { %p1850_p9 = por %p121_p6, %p47_p1  ;;  %p1508_p13 = scmp.lt.s32.totalorder %s1771_s17, 2 }
   0xf   : > { %s1855_s26 = scalar_select %p38_p7, %s1759_s14, %s40_s21  }
  0x10   : > { %s2368_s25 = scalar_select %p1850_p9, 1, 0 }
  0x11   : > { %p1857_p11 = por %p127_p10, %p53_p3  ;;  %s153_s28 = sand.u32 1, %s1759_s14  }
  0x12   : > { %s1466_s29 = sshll.u32 %s153_s28, 7  ;;  %s1494_s30 = sshll.u32 %s1767_s16, 11 }
  0x13   : > { %s2369_s27 = scalar_select %p1857_p11, 1, 0 }
  0x14   : > { %s1868_s6 = scalar_lea.hbm %s2361_s0, %s1494_s30  ;;  %s157_s7 = scalar_lea.vmem [#allocation2], %s1466_s29 }
  0x15   : > { %s167_s8 = sshll.u32 %s157_s7, 4  ;;  %p1874_p0 = pnand %p1508_p13, %p1840_p4  ;;  %s1870_s8 = int_to_ptr.vmem [resolvable:$true] %s167_s8 }
  0x16   : > { %s154_s10 = scalar_lea.sflag [#allocation3], %s153_s28  ;;  %s1659_s11 = scalar_lea.hbm %s1868_s6, 2048 }
  0x17   : > { %p1660_p3 = scmp.ne.s32.totalorder %s1868_s6, %s1659_s11  ;;  %p1661_p5 = pneg %p1874_p0 }
  0x18   : > { %s1664_s21 = scalar_lea.hbm %s2361_s0, 4096  ;;  %p1665_p4 = scmp.lt.u32.totalorder %s1868_s6, %s2361_s0 }
  0x19   : > { %p1662_p6 = pnand %p1661_p5, %p1660_p3  ;;  %p1666_p10 = scmp.lt.u32.totalorder %s1664_s21, %s1659_s11 }
  0x1a   : > { %p1668_p12 = scmp.lt.u32.totalorder %s1659_s11, %s1868_s6 }
  0x1b   : > { %p1663_p7 = pneg %p1662_p6  ;;  %p1667_p13 = por %p1666_p10, %p1665_p4 }
  0x1d   : > { %p1669_p1 = por %p1668_p12, %p1667_p13 }
  0x1f   : > { %p1670_p2 = pnand %p1669_p1, %p1663_p7 }
  0x21   : > { %1673 = shalt.err (!%p1670_p2)
}
  0x22   : > { %s1674_s28 = scalar_lea.vmem %s1870_s8, 2048  ;;  %s1773_s29 = smov [#allocation2]  }
  0x23   : > { %p1675_p3 = scmp.ne.s32.totalorder %s1870_s8, %s1674_s28  ;;  %s1679_s30 = sshll.u32 %s1773_s29, 4  ;;  %s1680_s30 = int_to_ptr.vmem [resolvable:$false] %s1679_s30 }
  0x24   : > { %s1681_s4 = scalar_lea.vmem %s1680_s30, 4096  ;;  %p1682_p9 = scmp.lt.s32.totalorder %s1870_s8, %s1680_s30 }
  0x25   : > { %p1677_p6 = pnand %p1675_p3, %p1661_p5  ;;  %p1683_p4 = scmp.lt.s32.totalorder %s1681_s4, %s1674_s28 }
  0x27   : > { %p1678_p11 = pneg %p1677_p6  ;;  %p1684_p10 = por %p1683_p4, %p1682_p9 }
  0x29   : > { %p1685_p12 = pnand %p1684_p10, %p1678_p11 }
  0x2b   : > { %1688 = shalt.err (!%p1685_p12)
}
  0x2c   : > { %1503 = dma.hbm_to_vmem [thread:$0]  (!%p1874_p0), %s1868_s6, 2048, %s1870_s8, %s154_s10  }
  0x2d   : > { %p2371_p1 = scmp.lt.s32.totalorder %s1771_s17, 3  ;;  %p2372_p2 = scmp.ge.s32.totalorder %s1771_s17, 1 }
  0x2f   : > { %p173_p5 = pnand %p2372_p2, %p2371_p1 }
  0x30   : > { %s1910_s5 = sand.u32 (!%p173_p5), 1, %s1755_s13  }
  0x31   : > { %176 = sbr.rel (%p173_p5) target bundleno = 427 (0x1ab), region = 32  ;;  %s1470_s7 = sshll.u32 (!%p173_p5), %s1910_s5, 7 }
  0x32   : > { %s179_s11 = scalar_lea.sflag (!%p173_p5), [#allocation3], %s1910_s5  ;;  %s1914_s18 = scalar_lea.vmem (!%p173_p5), [#allocation2], %s1470_s7 }
  0x38   : > { %1742 = dma.done.wait (%p1846_p8), %s179_s11, 2048  }
  0x39   : > { %1744 = vsyncadd (%p1846_p8), %s179_s11, 4294965248  ;;  %v1774_v0 = vmov 0.0   ;;  %v1775_v1 = vmov 0   ;;  %v212_v2 = vlaneseq  ;;  %v263_v3 = vld [vmem:[%s1914_s18 + $0x8] sm:$0xff]  ;;  %v265_v4 = vld [vmem:[%s1914_s18 + $0x18] sm:$0xff]  ;;  %vm336_vm0 = vcmask 64512  }
  0x3a   : > { %407 = vmatprep.mubr.f32.mxu0 %v1774_v0  ;;  %484 = vmatprep.mubr.f32.mxu1 %v1774_v0  ;;  %v262_v5 = vld [vmem:[%s1914_s18] sm:$0xff]  ;;  %v264_v6 = vld [vmem:[%s1914_s18 + $0x10] sm:$0xff]  ;;  %v267_v8 = vld [vmem:[%s1914_s18 + $0x28] sm:$0xff]  ;;  %s1471_s23 = sshll.u32 %s1910_s5, 8  ;;  %s1495_s29 = sshll.u32 %s1763_s15, 12 }
  0x3b   : > { %1562 = vset.pattern.permute.xlu0 %v1775_v1  ;;  %343 = vmatprep.subr.mxu0 %v263_v3  ;;  %v207_v7 = vld [vmem:[%s2362_s1] sm:$0xff]  ;;  %v269_v9 = vld [vmem:[%s1914_s18 + $0x38] sm:$0xff]  ;;  %v268_v11 = vld [vmem:[%s1914_s18 + $0x30] sm:$0xff]  ;;  %v213_v12 = vand.u32 127, %v212_v2  ;;  %s2198_s28 = scalar_lea.vmem [#allocation5], %s1471_s23  ;;  %s2308_s11 = scalar_lea.hbm %s2364_s3, %s1495_s29 }
  0x3c   : > { %420 = vmatprep.subr.mxu1 %v265_v4  ;;  %344 = vmatpush1.msra.mxu0 %v262_v5  ;;  %v266_v10 = vld [vmem:[%s1914_s18 + $0x20] sm:$0xff]  ;;  %v208_v13 = vld [vmem:[%s2362_s1 + $0x8] sm:$0xff]  ;;  %v273_v15 = vld [vmem:[%s1914_s18 + $0x58] sm:$0xff]  ;;  %s1375_s30 = sshll.u32 %s2198_s28, 4  ;;  %p2373_p9 = scmp.ne.s32.totalorder %s2368_s25, 0  ;;  %s2310_s30 = int_to_ptr.vmem [resolvable:$true] %s1375_s30 }
  0x3d   : > { %421 = vmatpush1.msra.mxu1 %v264_v6  ;;  %1472 = vmatmul.mubr.msk.f32.vlgmr.msra.gmra.mrb[0].mxu0 %vm336_vm0, %v207_v7  ;;  %v271_v14 = vld [vmem:[%s1914_s18 + $0x48] sm:$0xff]  ;;  %v228_v16 = vadd.s32 1920, %v213_v12  ;;  %v209_v17 = vld [vmem:[%s2363_s2] sm:$0xff]  ;;  %v272_v19 = vld [vmem:[%s1914_s18 + $0x50] sm:$0xff]  ;;  %s1689_s24 = scalar_lea.vmem %s2310_s30, 4096  ;;  %s1776_s15 = smov [#allocation5]  }
  0x3e   : > { %1474 = vmatmul.mubr.msk.f32.vlgmr.msra.gmra.mrb[0].mxu1 %vm336_vm0, %v207_v7  ;;  %497 = vmatprep.subr.mxu0 %v267_v8  ;;  %v270_v18 = vld [vmem:[%s1914_s18 + $0x40] sm:$0xff]  ;;  %v275_v20 = vld [vmem:[%s1914_s18 + $0x68] sm:$0xff]  ;;  %v277_v21 = vld [vmem:[%s1914_s18 + $0x78] sm:$0xff]  ;;  %p1690_p8 = scmp.ne.s32.totalorder %s2310_s30, %s1689_s24  ;;  %s1693_s6 = sshll.u32 %s1776_s15, 4  ;;  %s1694_s6 = int_to_ptr.vmem [resolvable:$false] %s1693_s6 }
  0x3f   : > { %574 = vmatprep.subr.mxu1 %v269_v9  ;;  %498 = vmatpush1.msra.mxu0 %v266_v10  ;;  %vm261_vm1 = vcmp.lt.s32.totalorder %v228_v16, 2000  ;;  %v210_v22 = vld [vmem:[%s2363_s2 + $0x8] sm:$0xff]  ;;  %v274_v23 = vld [vmem:[%s1914_s18 + $0x60] sm:$0xff]  ;;  %v276_v24 = vld [vmem:[%s1914_s18 + $0x70] sm:$0xff]  ;;  %s1360_s18 = scalar_lea.sflag [#allocation4], %s1910_s5  ;;  %s1695_s8 = scalar_lea.vmem %s1694_s6, 8192 }
  0x40   : > { %575 = vmatpush1.msra.mxu1 %v268_v11  ;;  %413 = vmatprep.mubr.f32.mxu0 %v1774_v0  ;;  %p1691_p11 = pnand %p1690_p8, %p2373_p9  ;;  %p1696_p7 = scmp.lt.s32.totalorder %s2310_s30, %s1694_s6 }
  0x41   : > { %490 = vmatprep.mubr.f32.mxu1 %v1774_v0  ;;  %1473 = vmatmul.mubr.msk.f32.gmra.mrb[2].mxu0 %vm336_vm0, %v208_v13  ;;  %p1697_p13 = scmp.lt.s32.totalorder %s1695_s8, %s1689_s24 }
  0x42   : > { %1475 = vmatmul.mubr.msk.f32.gmra.mrb[2].mxu1 %vm336_vm0, %v208_v13  ;;  %561 = vmatprep.mubr.f32.mxu0 %v1774_v0  ;;  %p1692_p0 = pneg %p1691_p11 }
  0x43   : > { %638 = vmatprep.mubr.f32.mxu1 %v1774_v0  ;;  %651 = vmatprep.subr.mxu0 %v271_v14  ;;  %p1698_p3 = por %p1697_p13, %p1696_p7 }
  0x44   : > { %728 = vmatprep.subr.mxu1 %v273_v15  ;;  %328 = vperm.xlu0 %1562, %v209_v17  }
  0x45   : > { %1476 = vmatmul.mubr.msk.f32.vlgmr.msra.gmra.mrb[4].mxu0 %vm336_vm0, %v207_v7  ;;  %p1699_p6 = pnand %p1698_p3, %p1692_p0 }
  0x46   : > { %1478 = vmatmul.mubr.msk.f32.vlgmr.msra.gmra.mrb[4].mxu1 %vm336_vm0, %v207_v7  ;;  %652 = vmatpush1.msra.mxu0 %v270_v18 }
  0x47   : > { %729 = vmatpush1.msra.mxu1 %v272_v19  ;;  %567 = vmatprep.mubr.f32.mxu0 %v1774_v0 }
  0x48   : > { %644 = vmatprep.mubr.f32.mxu1 %v1774_v0  ;;  %805 = vmatprep.subr.mxu0 %v275_v20 }
  0x49   : > { %1486 = vmatprep.subr.msk.mxu1 %vm261_vm1, %v277_v21  ;;  %1477 = vmatmul.mubr.msk.f32.gmra.mrb[6].mxu0 %vm336_vm0, %v208_v13 }
  0x4a   : > { %1479 = vmatmul.mubr.msk.f32.gmra.mrb[6].mxu1 %vm336_vm0, %v208_v13  ;;  %715 = vmatprep.mubr.f32.mxu0 %v1774_v0 }
  0x4b   : > { %792 = vmatprep.mubr.f32.mxu1 %v1774_v0  ;;  %333 = vperm.xlu0 %1562, %v210_v22  }
  0x4d   : > { %1480 = vmatmul.mubr.msk.f32.vlgmr.msra.gmra.mrb[8].mxu0 %vm336_vm0, %v207_v7 }
  0x4e   : > { %1482 = vmatmul.mubr.msk.f32.vlgmr.msra.gmra.mrb[8].mxu1 %vm336_vm0, %v207_v7  ;;  %806 = vmatpush1.msra.mxu0 %v274_v23 }
  0x4f   : > { %883 = vmatpush1.msra.mxu1 %v276_v24  ;;  %721 = vmatprep.mubr.f32.mxu0 %v1774_v0 }
  0x50   : > { %798 = vmatprep.mubr.f32.mxu1 %v1774_v0 }
  0x51   : > { %1481 = vmatmul.mubr.msk.f32.gmra.mrb[10].mxu0 %vm336_vm0, %v208_v13 }
  0x52   : > { %1483 = vmatmul.mubr.msk.f32.gmra.mrb[10].mxu1 %vm336_vm0, %v208_v13  ;;  %869 = vmatprep.mubr.f32.mxu0 %v1774_v0 }
  0x53   : > { %946 = vmatprep.mubr.f32.mxu1 %v1774_v0 }
  0x55   : > { %1484 = vmatmul.mubr.msk.f32.vlgmr.msra.gmra.mrb[12].mxu0 %vm336_vm0, %v207_v7 }
  0x56   : > { %1487 = vmatmul.mubr.msk.f32.vlgmr.msra.gmra.mrb[12].mxu1 %vm336_vm0, %v207_v7  ;;  %875 = vmatprep.mubr.f32.mxu0 %v1774_v0 }
  0x57   : > { %952 = vmatprep.mubr.f32.mxu1 %v1774_v0 }
  0x59   : > { %1485 = vmatmul.mubr.msk.f32.gmra.mrb[14].mxu0 %vm336_vm0, %v208_v13 }
  0x5a   : > { %1488 = vmatmul.mubr.msk.f32.gmra.mrb[14].mxu1 %vm336_vm0, %v208_v13 }
  0xc3   : > { %v1980_v25 = vpop.permute.xlu0 %328 }
  0xca   : > { %v1982_v30 = vpop.permute.xlu0 %333 }
 0x110   : > { %v409_v26 = vpop.f32.mrb[0].mxu0 }
 0x111   : > { %v486_v27 = vpop.f32.mrb[0].mxu1  ;;  %v411_v28 = vpop.f32.mrb[1].mxu0  ;;  %v1985_v33 = vadd.f32 %v409_v26, %v1980_v25 }
 0x112   : > { %v488_v29 = vpop.f32.mrb[1].mxu1  ;;  %v1988_v34 = vadd.f32 %v486_v27, %v1980_v25  ;;  %v1997_v39 = vadd.f32 %v411_v28, %v1980_v25 }
 0x113   : > { %v2000_v40 = vadd.f32 %v488_v29, %v1980_v25 }
 0x114   : > { %v415_v31 = vpop.f32.mrb[2].mxu0 }
 0x115   : > { %v492_v32 = vpop.f32.mrb[2].mxu1  ;;  %v1991_v35 = vadd.f32 %v415_v31, %v1982_v30  ;;  %v417_v37 = vpop.f32.mrb[3].mxu0 }
 0x116   : > { %v1994_v36 = vadd.f32 %v492_v32, %v1982_v30  ;;  %v494_v38 = vpop.f32.mrb[3].mxu1  ;;  %v2003_v41 = vadd.f32 %v417_v37, %v1982_v30 }
 0x117   : > { %v2006_v42 = vadd.f32 %v494_v38, %v1982_v30  ;;  %v959_v43 = vmax.f32 %v1985_v33, %v1991_v35 }
 0x118   : > { %v973_v44 = vmax.f32 %v1988_v34, %v1994_v36  ;;  %v966_v45 = vmax.f32 %v1997_v39, %v2003_v41  ;;  %v563_v47 = vpop.f32.mrb[4].mxu0 }
 0x119   : > { %v980_v46 = vmax.f32 %v2000_v40, %v2006_v42  ;;  %v640_v48 = vpop.f32.mrb[4].mxu1  ;;  %v960_v49 = vrot.slane %v959_v43, 4  ;;  %v565_v51 = vpop.f32.mrb[5].mxu0  ;;  %v2017_v57 = vadd.f32 %v563_v47, %v1980_v25 }
 0x11a   : > { %v974_v50 = vrot.slane %v973_v44, 4  ;;  %v642_v52 = vpop.f32.mrb[5].mxu1  ;;  %v967_v53 = vrot.slane %v966_v45, 4  ;;  %v2020_v58 = vadd.f32 %v640_v48, %v1980_v25  ;;  %v2023_v61 = vadd.f32 %v565_v51, %v1980_v25 }
 0x11b   : > { %v981_v54 = vrot.slane %v980_v46, 4  ;;  %v961_v55 = vmax.f32 %v959_v43, %v960_v49  ;;  %v2026_v62 = vadd.f32 %v642_v52, %v1980_v25 }
 0x11c   : > { %v975_v56 = vmax.f32 %v973_v44, %v974_v50  ;;  %v968_v59 = vmax.f32 %v966_v45, %v967_v53  ;;  %v569_v63 = vpop.f32.mrb[6].mxu0 }
 0x11d   : > { %v982_v60 = vmax.f32 %v980_v46, %v981_v54  ;;  %v646_v0 = vpop.f32.mrb[6].mxu1  ;;  %v962_v1 = vrot.slane %v961_v55, 2  ;;  %v2029_v3 = vadd.f32 %v569_v63, %v1982_v30  ;;  %v571_v5 = vpop.f32.mrb[7].mxu0 }
 0x11e   : > { %v976_v2 = vrot.slane %v975_v56, 2  ;;  %v2032_v4 = vadd.f32 %v646_v0, %v1982_v30  ;;  %v648_v6 = vpop.f32.mrb[7].mxu1  ;;  %v969_v7 = vrot.slane %v968_v59, 2  ;;  %v2035_v9 = vadd.f32 %v571_v5, %v1982_v30 }
 0x11f   : > { %v983_v8 = vrot.slane %v982_v60, 2  ;;  %v2038_v10 = vadd.f32 %v648_v6, %v1982_v30  ;;  %v963_v11 = vmax.f32 %v961_v55, %v962_v1  ;;  %v987_v13 = vmax.f32 %v2017_v57, %v2029_v3 }
 0x120   : > { %v977_v12 = vmax.f32 %v975_v56, %v976_v2  ;;  %v1001_v14 = vmax.f32 %v2020_v58, %v2032_v4  ;;  %v970_v15 = vmax.f32 %v968_v59, %v969_v7  ;;  %v994_v17 = vmax.f32 %v2023_v61, %v2035_v9  ;;  %v717_v19 = vpop.f32.mrb[8].mxu0 }
 0x121   : > { %v984_v16 = vmax.f32 %v982_v60, %v983_v8  ;;  %v1008_v18 = vmax.f32 %v2026_v62, %v2038_v10  ;;  %v794_v20 = vpop.f32.mrb[8].mxu1  ;;  %v964_v21 = vrot.slane %v963_v11, 1  ;;  %v988_v23 = vrot.slane %v987_v13, 4  ;;  %v719_v26 = vpop.f32.mrb[9].mxu0 }
 0x122   : > { %v978_v22 = vrot.slane %v977_v12, 1  ;;  %v1002_v24 = vrot.slane %v1001_v14, 4  ;;  %v796_v27 = vpop.f32.mrb[9].mxu1  ;;  %v971_v28 = vrot.slane %v970_v15, 1  ;;  %v995_v31 = vrot.slane %v994_v17, 4 }
 0x123   : > { %v985_v29 = vrot.slane %v984_v16, 1  ;;  %v1009_v32 = vrot.slane %v1008_v18, 4  ;;  %v965_v37 = vmax.f32 %v963_v11, %v964_v21  ;;  %v989_v43 = vmax.f32 %v987_v13, %v988_v23 }
 0x124   : > { %v979_v38 = vmax.f32 %v977_v12, %v978_v22  ;;  %v1003_v44 = vmax.f32 %v1001_v14, %v1002_v24  ;;  %v972_v45 = vmax.f32 %v970_v15, %v971_v28  ;;  %v996_v47 = vmax.f32 %v994_v17, %v995_v31  ;;  %v723_v49 = vpop.f32.mrb[10].mxu0 }
 0x125   : > { %v986_v46 = vmax.f32 %v984_v16, %v985_v29  ;;  %v1010_v48 = vmax.f32 %v1008_v18, %v1009_v32  ;;  %v800_v50 = vpop.f32.mrb[10].mxu1  ;;  %v1071_v51 = vsub.f32 %v1985_v33, %v965_v37  ;;  %v1087_v52 = vsub.f32 %v1991_v35, %v965_v37  ;;  %v2052_v55 = vpop.f32.mrb[11].mxu0 }
 0x126   : > { %v1073_v53 = vsub.f32 %v1988_v34, %v979_v38  ;;  %v1089_v54 = vsub.f32 %v1994_v36, %v979_v38  ;;  %v2054_v56 = vpop.f32.mrb[11].mxu1  ;;  %v1072_v59 = vsub.f32 %v1997_v39, %v972_v45  ;;  %v1088_v60 = vsub.f32 %v2003_v41, %v972_v45 }
 0x127   : > { %v1074_v63 = vsub.f32 %v2000_v40, %v986_v46  ;;  %v1090_v0 = vsub.f32 %v2006_v42, %v986_v46  ;;  %v1103_v1 = vmul.f32 1.442695, %v1071_v51  ;;  %v1135_v33 = vmul.f32 1.442695, %v1087_v52 }
 0x128   : > { %v1107_v2 = vmul.f32 1.442695, %v1073_v53  ;;  %v2061_v35 = vadd.f32 %v717_v19, %v1980_v25  ;;  %v1139_v34 = vmul.f32 1.442695, %v1089_v54  ;;  %v1105_v36 = vmul.f32 1.442695, %v1072_v59 }
 0x129   : > { %v1137_v5 = vmul.f32 1.442695, %v1088_v60  ;;  %v2064_v6 = vadd.f32 %v794_v20, %v1980_v25  ;;  %1563 = vpow2.f32 %v1103_v1  ;;  %v1109_v39 = vmul.f32 1.442695, %v1074_v63  ;;  %v2066_v8 = vpop.f32.mrb[12].mxu0  ;;  %v2068_v12 = vpop.f32.mrb[12].mxu1 }
 0x12a   : > { %v1141_v7 = vmul.f32 1.442695, %v1090_v0  ;;  %v990_v41 = vrot.slane %v989_v43, 2  ;;  %1565 = vpow2.f32 %v1135_v33  ;;  %v1004_v40 = vrot.slane %v1003_v44, 2  ;;  %v2070_v13 = vpop.f32.mrb[13].mxu0  ;;  %v2078_v17 = vpop.f32.mrb[13].mxu1 }
 0x12b   : > { %v997_v42 = vrot.slane %v996_v47, 2  ;;  %v1011_v11 = vrot.slane %v1010_v48, 2  ;;  %1567 = vpow2.f32 %v1107_v2  ;;  %v2073_v15 = vadd.f32 %v719_v26, %v1980_v25 }
 0x12c   : > { %v991_v14 = vmax.f32 %v989_v43, %v990_v41  ;;  %v2076_v16 = vadd.f32 %v796_v27, %v1980_v25  ;;  %1569 = vpow2.f32 %v1139_v34  ;;  %v1005_v18 = vmax.f32 %v1003_v44, %v1004_v40  ;;  %v2080_v21 = vpop.f32.mrb[14].mxu0 }
 0x12d   : > { %v998_v19 = vmax.f32 %v996_v47, %v997_v42  ;;  %v1012_v20 = vmax.f32 %v1010_v48, %v1011_v11  ;;  %v2082_v22 = vpop.f32.mrb[14].mxu1  ;;  %1571 = vpow2.f32 %v1105_v36  ;;  %v2085_v24 = vadd.f32 %v723_v49, %v1982_v30  ;;  %v2090_v27 = vpop.f32.mrb[15].mxu0 }
 0x12e   : > { %v992_v23 = vrot.slane %v991_v14, 1  ;;  %v2088_v26 = vadd.f32 %v800_v50, %v1982_v30  ;;  %v2092_v28 = vpop.f32.mrb[15].mxu1  ;;  %1573 = vpow2.f32 %v1137_v5  ;;  %v1006_v29 = vrot.slane %v1005_v18, 1 }
 0x12f   : > { %v999_v31 = vrot.slane %v998_v19, 1  ;;  %v1013_v32 = vrot.slane %v1012_v20, 1  ;;  %1575 = vpow2.f32 %v1109_v39  ;;  %v1015_v38 = vmax.f32 %v2061_v35, %v2085_v24 }
 0x130   : > { %v993_v37 = vmax.f32 %v991_v14, %v992_v23  ;;  %v1029_v43 = vmax.f32 %v2064_v6, %v2088_v26  ;;  %1577 = vpow2.f32 %v1141_v7  ;;  %v1007_v44 = vmax.f32 %v1005_v18, %v1006_v29 }
 0x131   : > { %v1000_v45 = vmax.f32 %v998_v19, %v999_v31  ;;  %v1014_v46 = vmax.f32 %v1012_v20, %v1013_v32  ;;  %v1016_v49 = vrot.slane %v1015_v38, 4  ;;  %v2122_v40 = vadd.f32 %v2052_v55, %v1982_v30 }
 0x132   : > { %v1075_v47 = vsub.f32 %v2017_v57, %v993_v37  ;;  %v1091_v48 = vsub.f32 %v2029_v3, %v993_v37  ;;  %v1030_v50 = vrot.slane %v1029_v43, 4  ;;  %v1077_v51 = vsub.f32 %v2020_v58, %v1007_v44 }
 0x133   : > { %v1093_v52 = vsub.f32 %v2032_v4, %v1007_v44  ;;  %v1076_v53 = vsub.f32 %v2023_v61, %v1000_v45  ;;  %v1092_v54 = vsub.f32 %v2035_v9, %v1000_v45  ;;  %v2104_v59 = vpop.eup %1563  ;;  %v1078_v0 = vsub.f32 %v2026_v62, %v1014_v46 }
 0x134   : > { %v1111_v60 = vmul.f32 1.442695, %v1075_v47  ;;  %v1143_v63 = vmul.f32 1.442695, %v1091_v48  ;;  %v1094_v57 = vsub.f32 %v2038_v10, %v1014_v46  ;;  %v2108_v1 = vpop.eup %1565  ;;  %v1115_v3 = vmul.f32 1.442695, %v1077_v51 }
 0x135   : > { %v1147_v33 = vmul.f32 1.442695, %v1093_v52  ;;  %v1113_v2 = vmul.f32 1.442695, %v1076_v53  ;;  %v1017_v58 = vmax.f32 %v1015_v38, %v1016_v49  ;;  %v2110_v34 = vpop.eup %1567  ;;  %v1167_v61 = vadd.f32 %v2108_v1, %v2104_v59 }
 0x136   : > { %1579 = vpow2.f32 %v1111_v60  ;;  %v1145_v4 = vmul.f32 1.442695, %v1092_v54  ;;  %v1117_v9 = vmul.f32 1.442695, %v1078_v0  ;;  %v2114_v36 = vpop.eup %1569  ;;  %v1149_v62 = vmul.f32 1.442695, %v1094_v57 }
 0x137   : > { %1581 = vpow2.f32 %v1143_v63  ;;  %v1018_v5 = vrot.slane %v1017_v58, 2  ;;  %v1031_v10 = vmax.f32 %v1029_v43, %v1030_v50  ;;  %v2116_v39 = vpop.eup %1571  ;;  %v1168_v7 = vrot.slane %v1167_v61, 4 }
 0x138   : > { %v1181_v41 = vadd.f32 %v2114_v36, %v2110_v34  ;;  %1583 = vpow2.f32 %v1115_v3  ;;  %v2124_v42 = vpop.eup %1573  ;;  %v2128_v18 = vadd.f32 %v2054_v56, %v1982_v30  ;;  %v1022_v37 = vmax.f32 %v2073_v15, %v2122_v40 }
 0x139   : > { %1585 = vpow2.f32 %v1147_v33  ;;  %v1019_v11 = vmax.f32 %v1017_v58, %v1018_v5  ;;  %v1032_v14 = vrot.slane %v1031_v10, 2  ;;  %v2130_v19 = vpop.eup %1575  ;;  %v1169_v20 = vadd.f32 %v1168_v7, %v1167_v61 }
 0x13a   : > { %v1182_v23 = vrot.slane %v1181_v41, 4  ;;  %v1174_v29 = vadd.f32 %v2124_v42, %v2116_v39  ;;  %1587 = vpow2.f32 %v1113_v2  ;;  %v2134_v31 = vpop.eup %1577  ;;  %v1023_v47 = vrot.slane %v1022_v37, 4 }
 0x13b   : > { %1589 = vpow2.f32 %v1145_v4  ;;  %v1020_v55 = vrot.slane %v1019_v11, 1  ;;  %v1033_v32 = vmax.f32 %v1031_v10, %v1032_v14  ;;  %v1170_v38 = vrot.slane %v1169_v20, 2 }
 0x13c   : > { %v1183_v43 = vadd.f32 %v1182_v23, %v1181_v41  ;;  %v1175_v56 = vrot.slane %v1174_v29, 4  ;;  %v1188_v44 = vadd.f32 %v2134_v31, %v2130_v19  ;;  %1591 = vpow2.f32 %v1117_v9 }
 0x13d   : > { %v1021_v45 = vmax.f32 %v1019_v11, %v1020_v55  ;;  %v1034_v46 = vrot.slane %v1033_v32, 1  ;;  %v1171_v48 = vadd.f32 %v1170_v38, %v1169_v20  ;;  %1593 = vpow2.f32 %v1149_v62 }
 0x13e   : > { %v1184_v49 = vrot.slane %v1183_v43, 2  ;;  %v1176_v50 = vadd.f32 %v1175_v56, %v1174_v29  ;;  %v1189_v51 = vrot.slane %v1188_v44, 4 }
 0x13f   : > { %v1079_v52 = vsub.f32 %v2061_v35, %v1021_v45  ;;  %v1095_v53 = vsub.f32 %v2085_v24, %v1021_v45  ;;  %v1035_v54 = vmax.f32 %v1033_v32, %v1034_v46  ;;  %v1172_v63 = vrot.slane %v1171_v48, 1 }
 0x140   : > { %v2142_v60 = vpop.eup %1579  ;;  %v1185_v0 = vadd.f32 %v1184_v49, %v1183_v43  ;;  %v1177_v57 = vrot.slane %v1176_v50, 2  ;;  %v1190_v3 = vadd.f32 %v1189_v51, %v1188_v44  ;;  %v1024_v32 = vmax.f32 %v1022_v37, %v1023_v47 }
 0x141   : > { %v2144_v33 = vpop.eup %1581  ;;  %v1119_v2 = vmul.f32 1.442695, %v1079_v52  ;;  %v1151_v58 = vmul.f32 1.442695, %v1095_v53  ;;  %v1081_v61 = vsub.f32 %v2064_v6, %v1035_v54  ;;  %v1097_v4 = vsub.f32 %v2088_v26, %v1035_v54 }
 0x142   : > { %v2148_v9 = vpop.eup %1583  ;;  %v1173_v35 = vadd.f32 %v1172_v63, %v1171_v48  ;;  %v1186_v62 = vrot.slane %v1185_v0, 1  ;;  %v1178_v24 = vadd.f32 %v1177_v57, %v1176_v50  ;;  %v1191_v5 = vrot.slane %v1190_v3, 2 }
 0x143   : > { %v2150_v10 = vpop.eup %1585  ;;  %v1195_v7 = vadd.f32 %v2144_v33, %v2142_v60  ;;  %1595 = vpow2.f32 %v1119_v2  ;;  %v1123_v41 = vmul.f32 1.442695, %v1081_v61  ;;  %v1155_v11 = vmul.f32 1.442695, %v1097_v4 }
 0x144   : > { %v2154_v14 = vpop.eup %1587  ;;  %1597 = vrcp.f32 %v1173_v35  ;;  %v1187_v6 = vadd.f32 %v1186_v62, %v1185_v0  ;;  %v1179_v20 = vrot.slane %v1178_v24, 1  ;;  %v1192_v26 = vadd.f32 %v1191_v5, %v1190_v3 }
 0x145   : > { %v2156_v23 = vpop.eup %1589  ;;  %v1196_v29 = vrot.slane %v1195_v7, 4  ;;  %v1209_v55 = vadd.f32 %v2150_v10, %v2148_v9  ;;  %1599 = vpow2.f32 %v1151_v58  ;;  %v1025_v48 = vrot.slane %v1024_v32, 2 }
 0x146   : > { %1601 = vrcp.f32 %v1187_v6  ;;  %v1180_v38 = vadd.f32 %v1179_v20, %v1178_v24  ;;  %v1193_v43 = vrot.slane %v1192_v26, 1  ;;  %v1202_v56 = vadd.f32 %v2156_v23, %v2154_v14  ;;  %v2162_v44 = vpop.eup %1591 }
 0x147   : > { %v1197_v45 = vadd.f32 %v1196_v29, %v1195_v7  ;;  %v1210_v46 = vrot.slane %v1209_v55, 4  ;;  %1603 = vpow2.f32 %v1123_v41  ;;  %v1036_v51 = vmax.f32 %v2076_v16, %v2128_v18  ;;  %v2166_v37 = vpop.eup %1593 }
 0x148   : > { %1605 = vrcp.f32 %v1180_v38  ;;  %v1194_v49 = vadd.f32 %v1193_v43, %v1192_v26  ;;  %v1203_v50 = vrot.slane %v1202_v56, 4  ;;  %v1026_v53 = vmax.f32 %v1024_v32, %v1025_v48 }
 0x149   : > { %v1198_v47 = vrot.slane %v1197_v45, 2  ;;  %v1211_v52 = vadd.f32 %v1210_v46, %v1209_v55  ;;  %1607 = vpow2.f32 %v1155_v11  ;;  %v1216_v63 = vadd.f32 %v2166_v37, %v2162_v44 }
 0x14a   : > { %1609 = vrcp.f32 %v1194_v49  ;;  %v1204_v54 = vadd.f32 %v1203_v50, %v1202_v56  ;;  %v1037_v0 = vrot.slane %v1036_v51, 4  ;;  %v1027_v2 = vrot.slane %v1026_v53, 1 }
 0x14b   : > { %v1199_v57 = vadd.f32 %v1198_v47, %v1197_v45  ;;  %v1212_v3 = vrot.slane %v1211_v52, 2  ;;  %v2173_v58 = vadd.f32 %v2066_v8, %v1980_v25  ;;  %v1217_v4 = vrot.slane %v1216_v63, 4 }
 0x14c   : > { %v1205_v61 = vrot.slane %v1204_v54, 2  ;;  %v1038_v35 = vmax.f32 %v1036_v51, %v1037_v0  ;;  %v2177_v62 = vadd.f32 %v2068_v12, %v1980_v25  ;;  %v1028_v41 = vmax.f32 %v1026_v53, %v1027_v2 }
 0x14d   : > { %v2179_v24 = vpop.eup %1595  ;;  %v1200_v5 = vrot.slane %v1199_v57, 1  ;;  %v1213_v7 = vadd.f32 %v1212_v3, %v1211_v52  ;;  %v2183_v11 = vadd.f32 %v2070_v13, %v1980_v25  ;;  %v1218_v8 = vadd.f32 %v1217_v4, %v1216_v63 }
 0x14e   : > { %v1598_v6 = vpop.eup %1597  ;;  %v1206_v20 = vadd.f32 %v1205_v61, %v1204_v54  ;;  %v1039_v26 = vrot.slane %v1038_v35, 2  ;;  %v2187_v29 = vadd.f32 %v2078_v17, %v1980_v25  ;;  %v1080_v48 = vsub.f32 %v2073_v15, %v1028_v41 }
 0x14f   : > { %v2189_v55 = vpop.eup %1599  ;;  %v1295_v12 = vmul.f32 %v1598_v6, %v2104_v59  ;;  %v1311_v32 = vmul.f32 %v1598_v6, %v2108_v1  ;;  %v1201_v38 = vadd.f32 %v1200_v5, %v1199_v57  ;;  %v1214_v43 = vrot.slane %v1213_v7, 1 }
 0x150   : > { %v1602_v56 = vpop.eup %1601  ;;  %v1207_v45 = vrot.slane %v1206_v20, 1  ;;  %v1219_v13 = vrot.slane %v1218_v8, 2  ;;  %v1223_v46 = vadd.f32 %v2189_v55, %v2179_v24  ;;  %v1096_v47 = vsub.f32 %v2122_v40, %v1028_v41 }
 0x151   : > { %v2196_v49 = vpop.eup %1603  ;;  %1327 = vst [vmem:[%s2198_s28] sm:$0xff] %v1295_v12  ;;  %1343 = vst [vmem:[%s2198_s28 + $0x80] sm:$0xff] %v1311_v32  ;;  %v1297_v25 = vmul.f32 %v1602_v56, %v2110_v34  ;;  %v1313_v17 = vmul.f32 %v1602_v56, %v2114_v36  ;;  %1611 = vrcp.f32 %v1201_v38  ;;  %v1215_v59 = vadd.f32 %v1214_v43, %v1213_v7 }
 0x152   : > { %v1606_v1 = vpop.eup %1605  ;;  %v1208_v50 = vadd.f32 %v1207_v45, %v1206_v20  ;;  %v1220_v15 = vadd.f32 %v1219_v13, %v1218_v8  ;;  %v1224_v51 = vrot.slane %v1223_v46, 4  ;;  %v1121_v36 = vmul.f32 1.442695, %v1080_v48 }
 0x153   : > { %v2205_v52 = vpop.eup %1607  ;;  %1329 = vst [vmem:[%s2198_s28 + $0x10] sm:$0xff] %v1297_v25  ;;  %1345 = vst [vmem:[%s2198_s28 + $0x90] sm:$0xff] %v1313_v17  ;;  %v1296_v53 = vmul.f32 %v1606_v1, %v2116_v39  ;;  %v1312_v34 = vmul.f32 %v1606_v1, %v2124_v42  ;;  %1613 = vrcp.f32 %v1215_v59  ;;  %v1153_v39 = vmul.f32 1.442695, %v1096_v47 }
 0x154   : > { %v1610_v54 = vpop.eup %1609  ;;  %1615 = vrcp.f32 %v1208_v50  ;;  %v1221_v63 = vrot.slane %v1220_v15, 1  ;;  %v1225_v0 = vadd.f32 %v1224_v51, %v1223_v46  ;;  %v1237_v57 = vadd.f32 %v2205_v52, %v2196_v49 }
 0x155   : > { %1328 = vst [vmem:[%s2198_s28 + $0x8] sm:$0xff] %v1296_v53  ;;  %1344 = vst [vmem:[%s2198_s28 + $0x88] sm:$0xff] %v1312_v34  ;;  %v1298_v40 = vmul.f32 %v1610_v54, %v2130_v19  ;;  %v1314_v3 = vmul.f32 %v1610_v54, %v2134_v31  ;;  %1617 = vpow2.f32 %v1121_v36  ;;  %v1040_v4 = vmax.f32 %v1038_v35, %v1039_v26 }
 0x156   : > { %v1222_v42 = vadd.f32 %v1221_v63, %v1220_v15  ;;  %v1226_v2 = vrot.slane %v1225_v0, 2  ;;  %v1238_v61 = vrot.slane %v1237_v57, 4  ;;  %1619 = vpow2.f32 %v1153_v39 }
 0x157   : > { %1330 = vst [vmem:[%s2198_s28 + $0x18] sm:$0xff] %v1298_v40  ;;  %1346 = vst [vmem:[%s2198_s28 + $0x98] sm:$0xff] %v1314_v3  ;;  %v2221_v5 = vadd.f32 %v2080_v21, %v1982_v30  ;;  %v2225_v7 = vadd.f32 %v2082_v22, %v1982_v30  ;;  %v2229_v19 = vadd.f32 %v2090_v27, %v1982_v30  ;;  %v1041_v6 = vrot.slane %v1040_v4, 1 }
 0x158   : > { %1621 = vrcp.f32 %v1222_v42  ;;  %v1227_v31 = vadd.f32 %v1226_v2, %v1225_v0  ;;  %v1239_v41 = vadd.f32 %v1238_v61, %v1237_v57  ;;  %v2239_v22 = vadd.f32 %v2092_v28, %v1982_v30 }
 0x159   : > { %v1043_v35 = vmax.f32 %v2173_v58, %v2221_v5  ;;  %v1057_v20 = vmax.f32 %v2177_v62, %v2225_v7  ;;  %v1050_v21 = vmax.f32 %v2183_v11, %v2229_v19  ;;  %v1042_v26 = vmax.f32 %v1040_v4, %v1041_v6 }
 0x15a   : > { %v1228_v8 = vrot.slane %v1227_v31, 1  ;;  %v1240_v27 = vrot.slane %v1239_v41, 2  ;;  %v1064_v56 = vmax.f32 %v2187_v29, %v2239_v22 }
 0x15b   : > { %v1612_v12 = vpop.eup %1611  ;;  %v1044_v32 = vrot.slane %v1043_v35, 4  ;;  %v1058_v38 = vrot.slane %v1057_v20, 4  ;;  %v1051_v43 = vrot.slane %v1050_v21, 4  ;;  %v1082_v28 = vsub.f32 %v2076_v16, %v1042_v26 }
 0x15c   : > { %v1299_v45 = vmul.f32 %v1612_v12, %v2142_v60  ;;  %v1315_v13 = vmul.f32 %v1612_v12, %v2144_v33  ;;  %v1229_v46 = vadd.f32 %v1228_v8, %v1227_v31  ;;  %v1241_v48 = vadd.f32 %v1240_v27, %v1239_v41 }
 0x15d   : > { %v1614_v30 = vpop.eup %1613  ;;  %v1098_v25 = vsub.f32 %v2128_v18, %v1042_v26  ;;  %v1045_v17 = vmax.f32 %v1043_v35, %v1044_v32  ;;  %v1059_v59 = vmax.f32 %v1057_v20, %v1058_v38  ;;  %v1125_v51 = vmul.f32 1.442695, %v1082_v28 }
 0x15e   : > { %v1616_v1 = vpop.eup %1615  ;;  %1331 = vst [vmem:[%s2198_s28 + $0x20] sm:$0xff] %v1299_v45  ;;  %1347 = vst [vmem:[%s2198_s28 + $0xa0] sm:$0xff] %v1315_v13  ;;  %v1301_v50 = vmul.f32 %v1614_v30, %v2148_v9  ;;  %v1317_v60 = vmul.f32 %v1614_v30, %v2150_v10  ;;  %1623 = vrcp.f32 %v1229_v46  ;;  %v1242_v33 = vrot.slane %v1241_v48, 1 }
 0x15f   : > { %v2251_v15 = vpop.eup %1617  ;;  %v1300_v16 = vmul.f32 %v1616_v1, %v2154_v14  ;;  %v1316_v18 = vmul.f32 %v1616_v1, %v2156_v23  ;;  %v1157_v47 = vmul.f32 1.442695, %v1098_v25  ;;  %v1046_v34 = vrot.slane %v1045_v17, 2 }
 0x160   : > { %1333 = vst [vmem:[%s2198_s28 + $0x30] sm:$0xff] %v1301_v50  ;;  %1349 = vst [vmem:[%s2198_s28 + $0xb0] sm:$0xff] %v1317_v60  ;;  %v1243_v53 = vadd.f32 %v1242_v33, %v1241_v48  ;;  %v1060_v36 = vrot.slane %v1059_v59, 2  ;;  %v1052_v9 = vmax.f32 %v1050_v21, %v1051_v43  ;;  %v2257_v54 = vpop.eup %1619  ;;  %1625 = vpow2.f32 %v1125_v51 }
 0x161   : > { %1332 = vst [vmem:[%s2198_s28 + $0x28] sm:$0xff] %v1300_v16  ;;  %1348 = vst [vmem:[%s2198_s28 + $0xa8] sm:$0xff] %v1316_v18  ;;  %v1065_v10 = vrot.slane %v1064_v56, 4  ;;  %v1230_v14 = vadd.f32 %v2257_v54, %v2251_v15  ;;  %v1047_v23 = vmax.f32 %v1045_v17, %v1046_v34 }
 0x162   : > { %v1622_v63 = vpop.eup %1621  ;;  %1627 = vrcp.f32 %v1243_v53  ;;  %v1061_v0 = vmax.f32 %v1059_v59, %v1060_v36  ;;  %v1053_v3 = vrot.slane %v1052_v9, 2 }
 0x163   : > { %v1302_v57 = vmul.f32 %v1622_v63, %v2162_v44  ;;  %v1318_v40 = vmul.f32 %v1622_v63, %v2166_v37  ;;  %1629 = vpow2.f32 %v1157_v47  ;;  %v1231_v39 = vrot.slane %v1230_v14, 4 }
 0x164   : > { %v1048_v42 = vrot.slane %v1047_v23, 1  ;;  %v1062_v2 = vrot.slane %v1061_v0, 1  ;;  %v1066_v61 = vmax.f32 %v1064_v56, %v1065_v10  ;;  %v1054_v4 = vmax.f32 %v1052_v9, %v1053_v3 }
 0x165   : > { %1334 = vst [vmem:[%s2198_s28 + $0x38] sm:$0xff] %v1302_v57  ;;  %1350 = vst [vmem:[%s2198_s28 + $0xb8] sm:$0xff] %v1318_v40  ;;  %v1232_v31 = vadd.f32 %v1231_v39, %v1230_v14 }
 0x166   : > { %v1049_v41 = vmax.f32 %v1047_v23, %v1048_v42  ;;  %v1063_v6 = vmax.f32 %v1061_v0, %v1062_v2  ;;  %v1055_v35 = vrot.slane %v1054_v4, 1  ;;  %v1067_v20 = vrot.slane %v1066_v61, 2 }
 0x167   : > { %v1233_v44 = vrot.slane %v1232_v31, 2 }
 0x168   : > { %v1624_v21 = vpop.eup %1623  ;;  %v1083_v37 = vsub.f32 %v2173_v58, %v1049_v41  ;;  %v1099_v8 = vsub.f32 %v2221_v5, %v1049_v41  ;;  %v1085_v27 = vsub.f32 %v2177_v62, %v1063_v6  ;;  %v1101_v32 = vsub.f32 %v2225_v7, %v1063_v6 }
 0x169   : > { %v1303_v26 = vmul.f32 %v1624_v21, %v2179_v24  ;;  %v1319_v12 = vmul.f32 %v1624_v21, %v2189_v55  ;;  %v1056_v38 = vmax.f32 %v1054_v4, %v1055_v35  ;;  %v1234_v43 = vadd.f32 %v1233_v44, %v1232_v31 }
 0x16a   : > { %v1127_v56 = vmul.f32 1.442695, %v1083_v37  ;;  %v1159_v45 = vmul.f32 1.442695, %v1099_v8  ;;  %v1131_v13 = vmul.f32 1.442695, %v1085_v27  ;;  %v2273_v46 = vpop.eup %1625  ;;  %v1068_v24 = vmax.f32 %v1066_v61, %v1067_v20 }
 0x16b   : > { %1335 = vst [vmem:[%s2198_s28 + $0x40] sm:$0xff] %v1303_v26  ;;  %1351 = vst [vmem:[%s2198_s28 + $0xc0] sm:$0xff] %v1319_v12  ;;  %v1163_v58 = vmul.f32 1.442695, %v1101_v32  ;;  %v1084_v5 = vsub.f32 %v2183_v11, %v1056_v38  ;;  %v1100_v62 = vsub.f32 %v2229_v19, %v1056_v38  ;;  %v1235_v48 = vrot.slane %v1234_v43, 1 }
 0x16c   : > { %v1628_v55 = vpop.eup %1627  ;;  %1631 = vpow2.f32 %v1127_v56  ;;  %v1069_v19 = vrot.slane %v1068_v24, 1 }
 0x16d   : > { %v2279_v7 = vpop.eup %1629  ;;  %v1305_v30 = vmul.f32 %v1628_v55, %v2196_v49  ;;  %v1321_v28 = vmul.f32 %v1628_v55, %v2205_v52  ;;  %1633 = vpow2.f32 %v1159_v45  ;;  %v1129_v25 = vmul.f32 1.442695, %v1084_v5 }
 0x16e   : > { %v1236_v17 = vadd.f32 %v1235_v48, %v1234_v43  ;;  %v1244_v59 = vadd.f32 %v2279_v7, %v2273_v46  ;;  %1635 = vpow2.f32 %v1131_v13  ;;  %v1161_v11 = vmul.f32 1.442695, %v1100_v62 }
 0x16f   : > { %1337 = vst [vmem:[%s2198_s28 + $0x50] sm:$0xff] %v1305_v30  ;;  %1353 = vst [vmem:[%s2198_s28 + $0xd0] sm:$0xff] %v1321_v28  ;;  %1637 = vpow2.f32 %v1163_v58  ;;  %v1070_v50 = vmax.f32 %v1068_v24, %v1069_v19 }
 0x170   : > { %1639 = vrcp.f32 %v1236_v17  ;;  %v1245_v1 = vrot.slane %v1244_v59, 4 }
 0x171   : > { %1641 = vpow2.f32 %v1129_v25  ;;  %v1086_v49 = vsub.f32 %v2187_v29, %v1070_v50  ;;  %v1102_v52 = vsub.f32 %v2239_v22, %v1070_v50 }
 0x172   : > { %v1246_v60 = vadd.f32 %v1245_v1, %v1244_v59  ;;  %1643 = vpow2.f32 %v1161_v11 }
 0x173   : > { %v1133_v16 = vmul.f32 1.442695, %v1086_v49  ;;  %v1165_v18 = vmul.f32 1.442695, %v1102_v52 }
 0x174   : > { %v1247_v33 = vrot.slane %v1246_v60, 2 }
 0x175   : > { %1645 = vpow2.f32 %v1133_v16 }
 0x176   : > { %v1632_v51 = vpop.eup %1631  ;;  %v1248_v47 = vadd.f32 %v1247_v33, %v1246_v60  ;;  %1647 = vpow2.f32 %v1165_v18 }
 0x177   : > { %v1634_v53 = vpop.eup %1633 }
 0x178   : > { %v1636_v34 = vpop.eup %1635  ;;  %v1249_v36 = vrot.slane %v1248_v47, 1  ;;  %v1251_v9 = vadd.f32 %v1634_v53, %v1632_v51 }
 0x179   : > { %v1638_v10 = vpop.eup %1637 }
 0x17a   : > { %v1640_v63 = vpop.eup %1639  ;;  %v1250_v14 = vadd.f32 %v1249_v36, %v1248_v47  ;;  %v1252_v23 = vrot.slane %v1251_v9, 4  ;;  %v1265_v29 = vadd.f32 %v1638_v10, %v1636_v34 }
 0x17b   : > { %v1642_v0 = vpop.eup %1641  ;;  %v1304_v22 = vmul.f32 %v1640_v63, %v2251_v15  ;;  %v1320_v57 = vmul.f32 %v1640_v63, %v2257_v54 }
 0x17c   : > { %v1644_v40 = vpop.eup %1643  ;;  %1649 = vrcp.f32 %v1250_v14  ;;  %v1253_v3 = vadd.f32 %v1252_v23, %v1251_v9  ;;  %v1266_v39 = vrot.slane %v1265_v29, 4 }
 0x17d   : > { %1336 = vst [vmem:[%s2198_s28 + $0x48] sm:$0xff] %v1304_v22  ;;  %1352 = vst [vmem:[%s2198_s28 + $0xc8] sm:$0xff] %v1320_v57  ;;  %v1258_v42 = vadd.f32 %v1644_v40, %v1642_v0 }
 0x17e   : > { %v1254_v2 = vrot.slane %v1253_v3, 2  ;;  %v1267_v61 = vadd.f32 %v1266_v39, %v1265_v29 }
 0x17f   : > { %v1259_v4 = vrot.slane %v1258_v42, 4  ;;  %v1646_v6 = vpop.eup %1645 }
 0x180   : > { %v1255_v31 = vadd.f32 %v1254_v2, %v1253_v3  ;;  %v1268_v41 = vrot.slane %v1267_v61, 2  ;;  %v1648_v20 = vpop.eup %1647 }
 0x181   : > { %v1260_v35 = vadd.f32 %v1259_v4, %v1258_v42  ;;  %v1272_v44 = vadd.f32 %v1648_v20, %v1646_v6 }
 0x182   : > { %v1256_v21 = vrot.slane %v1255_v31, 1  ;;  %v1269_v15 = vadd.f32 %v1268_v41, %v1267_v61 }
 0x183   : > { %v1261_v54 = vrot.slane %v1260_v35, 2  ;;  %v1273_v26 = vrot.slane %v1272_v44, 4 }
 0x184   : > { %v1257_v37 = vadd.f32 %v1256_v21, %v1255_v31  ;;  %v1270_v8 = vrot.slane %v1269_v15, 1 }
 0x185   : > { %v1262_v27 = vadd.f32 %v1261_v54, %v1260_v35  ;;  %v1274_v45 = vadd.f32 %v1273_v26, %v1272_v44 }
 0x186   : > { %v1650_v12 = vpop.eup %1649  ;;  %1651 = vrcp.f32 %v1257_v37  ;;  %v1271_v32 = vadd.f32 %v1270_v8, %v1269_v15 }
 0x187   : > { %v1306_v38 = vmul.f32 %v1650_v12, %v2273_v46  ;;  %v1322_v43 = vmul.f32 %v1650_v12, %v2279_v7  ;;  %v1263_v56 = vrot.slane %v1262_v27, 1  ;;  %v1275_v58 = vrot.slane %v1274_v45, 2 }
 0x188   : > { %1653 = vrcp.f32 %v1271_v32 }
 0x189   : > { %1338 = vst [vmem:[%s2198_s28 + $0x58] sm:$0xff] %v1306_v38  ;;  %1354 = vst [vmem:[%s2198_s28 + $0xd8] sm:$0xff] %v1322_v43  ;;  %v1264_v13 = vadd.f32 %v1263_v56, %v1262_v27  ;;  %v1276_v5 = vadd.f32 %v1275_v58, %v1274_v45 }
 0x18b   : > { %1655 = vrcp.f32 %v1264_v13  ;;  %v1277_v62 = vrot.slane %v1276_v5, 1 }
 0x18d   : > { %v1278_v24 = vadd.f32 %v1277_v62, %v1276_v5 }
 0x18f   : > { %1657 = vrcp.f32 %v1278_v24 }
 0x190   : > { %v1652_v46 = vpop.eup %1651 }
 0x191   : > { %v1307_v55 = vmul.f32 %v1652_v46, %v1632_v51  ;;  %v1323_v48 = vmul.f32 %v1652_v46, %v1634_v53 }
 0x192   : > { %v1654_v7 = vpop.eup %1653 }
 0x193   : > { %1339 = vst [vmem:[%s2198_s28 + $0x60] sm:$0xff] %v1307_v55  ;;  %1355 = vst [vmem:[%s2198_s28 + $0xe0] sm:$0xff] %v1323_v48  ;;  %v1309_v30 = vmul.f32 %v1654_v7, %v1636_v34  ;;  %v1325_v28 = vmul.f32 %v1654_v7, %v1638_v10 }
 0x195   : > { %v1656_v25 = vpop.eup %1655  ;;  %1341 = vst [vmem:[%s2198_s28 + $0x70] sm:$0xff] %v1309_v30  ;;  %1357 = vst [vmem:[%s2198_s28 + $0xf0] sm:$0xff] %v1325_v28 }
 0x196   : > { %v1308_v17 = vmul.f32 %v1656_v25, %v1642_v0  ;;  %v1324_v59 = vmul.f32 %v1656_v25, %v1644_v40 }
 0x198   : > { %1340 = vst [vmem:[%s2198_s28 + $0x68] sm:$0xff] %v1308_v17  ;;  %1356 = vst [vmem:[%s2198_s28 + $0xe8] sm:$0xff] %v1324_v59 }
 0x199   : > { %v1658_v11 = vpop.eup %1657 }
 0x19a   : > { %v1310_v19 = vmul.f32 %v1658_v11, %v1646_v6  ;;  %v1326_v1 = vmul.f32 %v1658_v11, %v1648_v20 }
 0x19c   : > { %1342 = vst [vmem:[%s2198_s28 + $0x78] sm:$0xff] %v1310_v19  ;;  %1358 = vst [vmem:[%s2198_s28 + $0xf8] sm:$0xff] %v1326_v1 }
 0x19d   : > { %1702 = shalt.err (!%p1699_p6)
}
 0x19e   : > { %s1703_s9 = scalar_lea.hbm %s2308_s11, 4096  ;;  %s1707_s21 = scalar_lea.hbm %s2364_s3, 8192 }
 0x19f   : > { %p1704_p4 = scmp.ne.s32.totalorder %s2308_s11, %s1703_s9  ;;  %p1708_p1 = scmp.lt.u32.totalorder %s2308_s11, %s2364_s3 }
 0x1a0   : > { %p1709_p2 = scmp.lt.u32.totalorder %s1707_s21, %s1703_s9  ;;  %p1711_p8 = scmp.lt.u32.totalorder %s1703_s9, %s2308_s11 }
 0x1a1   : > { %p1705_p10 = pnand %p1704_p4, %p2373_p9 }
 0x1a2   : > { %p1710_p5 = por %p1709_p2, %p1708_p1 }
 0x1a3   : > { %p1706_p12 = pneg %p1705_p10 }
 0x1a4   : > { %p1712_p11 = por %p1711_p8, %p1710_p5 }
 0x1a6   : > { %p1713_p0 = pnand %p1712_p11, %p1706_p12 }
 0x1a8   : > { %1716 = shalt.err (!%p1713_p0)
}
 0x1a9   : > { %s1777_s28 = smov 2048   ;;  %s1778_s29 = smov 128  }
 0x1aa   : > { %1498 = dma.vmem_to_hbm [thread:$0]  (%p2373_p9), %s2310_s30, 4096, %s2308_s11, %s1360_s18, %s1777_s28, %s1777_s28, %s1778_s29  }
 0x1ab PF: > { %s1390_s4 = sand.u32 1, %s1751_s12   ;;  %p2374_p7 = scmp.ne.s32.totalorder %s2369_s27, 0 }
 0x1ac   : > { %p2375_p13 = scmp.ge.s32.totalorder %s1771_s17, 2  ;;  %s1391_s7 = scalar_lea.sflag [#allocation4], %s1390_s4 }
 0x1ae   : > { %p1505_p3 = pnand %p2375_p13, %p2374_p7 }
 0x1b0   : > { %1746 = dma.done.wait (!%p1505_p3), %s1391_s7, 4096  }
 0x1b1   : > { %1748 = vsyncadd (!%p1505_p3), %s1391_s7, 4294963200  ;;  %s19_s17 = sadd.s32 1, %s1771_s17   ;;  %s2376_s12 = smov %s1755_s13 }
 0x1b2   : > { %p16_p6 = scmp.ge.s32.totalorder %s19_s17, 4   ;;  %s2377_s13 = smov %s1759_s14 }
 0x1b3   : > { %s2378_s14 = smov %s1855_s26  ;;  %s2379_s15 = smov %s1767_s16 }
 0x1b4   : > { %s2380_s16 = smov %s2382_s20  ;;  %18 = sbr.rel (!%p16_p6) target bundleno = 6 (0x6), region = 77 }
 0x1bb   :  { %1396 = vsyncpa [#allocation3], 1 }
 0x1bc   :  { %1398 = vsyncpa [#allocation3 + $0x1], 1 }
 0x1bd   :  { %1399 = vsyncpa [#allocation4], 1 }
 0x1be   :  { %1401 = vsyncpa [#allocation4 + $0x1], 1 }

</bundles_post_ra>
